<compile_context>
chip_gen: v7x
topology: tpu7x:2x2x1
jax: 0.10.0
libtpu: 0.0.40
codegen_flags: <defaults>
</compile_context>

<pallas_src>
import functools

import jax
import jax.numpy as jnp
import numpy as np
from jax import lax
from jax.experimental import pallas as pl
from jax.experimental.pallas import tpu as pltpu


OW_PAD = 128  # lane-dense output width


# ----------------------------- Pallas kernel ---------------------------------
def _convt_fused_kernel(x_ref, cs_ref, ll_ref, o_ref, xc_ref, *, K, C):
    """One grid step == one batch element.

    x_ref  : (1, C, W)        bf16 input image, rows = (ci, ih) flattened (free reshape)
    cs_ref : (K, W, OW_PAD)   bf16 column scatter: CS[kw, iw, ow] = [ow == S*iw + kw - P]
    ll_ref : (R, K*C)         bf16 weight-carrying row scatter (precomputed in wrapper)
    o_ref  : (1, R, OW_PAD)   f32 output, rows = (co, oh) flattened, lanes padded to 128
    xc_ref : (K*C, OW_PAD)    bf16 VMEM scratch staging the K column-scattered inputs
    """
    X = x_ref[0]                                                     # (C, W) bf16
    # Stage 1: K tiny matmuls scatter the input columns iw -> ow for each kw.
    # CS is 0/1 with <=1 nonzero per column, so the bf16 cast of the f32 result is exact.
    for kw in range(K):                                              # static unroll (K == 3)
        xc = jnp.dot(X, cs_ref[kw], preferred_element_type=jnp.float32)   # (C, OW_PAD)
        xc_ref[pl.ds(kw * C, C), :] = xc.astype(xc_ref.dtype)
    # Stage 2: one big bf16 MXU matmul, contraction depth K*C, f32 accumulation.
    o_ref[0] = jnp.dot(ll_ref[...], xc_ref[...],
                       preferred_element_type=jnp.float32).astype(o_ref.dtype)


# ------------------------------ Forward pass ----------------------------------
@functools.partial(jax.jit, static_argnames=("kernel_size", "stride", "padding"))
def upsampling_block_forward(x_nchw, weight, kernel_size=3, stride=2, padding=0):
    """ConvTranspose2d(Cin, Cout, k, stride, padding, bias=False).

    x_nchw : (N, Cin, H, W)        float32
    weight : (Cin, Cout, kH, kW)   float32 (PyTorch ConvTranspose2d layout)
    returns: (N, Cout, OH, OW)     float32
    """
    K, S, P = kernel_size, stride, padding
    N, Cin, H, W = x_nchw.shape
    Cout = weight.shape[1]
    OH = (H - 1) * S - 2 * P + K
    OW = (W - 1) * S - 2 * P + K
    R = Cout * OH            # output rows (co, oh)
    C = Cin * H              # input  rows (ci, ih)
    KC = K * C
    assert OW <= OW_PAD, "lane-dense padding assumes OW <= 128 at these shapes"

    # Free, contiguous reshape: rows flatten (ci, ih).  bf16 feed for the MXU.
    x3 = x_nchw.reshape(N, C, W).astype(jnp.bfloat16)

    # --- weight/shape-only preprocessing (one-time; outside the kernel) -------
    # Column scatter CS[kw, iw, ow] = [ow == S*iw + kw - P and ow < OW]  (numpy constant)
    kw_i = np.arange(K, dtype=np.int64).reshape(K, 1, 1)
    iw_i = np.arange(W, dtype=np.int64).reshape(1, W, 1)
    ow_i = np.arange(OW_PAD, dtype=np.int64).reshape(1, 1, OW_PAD)
    cs_np = ((ow_i == S * iw_i + kw_i - P) & (ow_i < OW)).astype(np.float32)
    cs = jnp.asarray(cs_np, dtype=jnp.bfloat16)                      # (K, W, OW_PAD)

    # Row-scatter mask over height: mask_h[kh, oh, ih] = [oh == S*ih + kh - P]
    kh_i = np.arange(K, dtype=np.int64).reshape(K, 1, 1)
    oh_i = np.arange(OH, dtype=np.int64).reshape(1, OH, 1)
    ih_i = np.arange(H, dtype=np.int64).reshape(1, 1, H)
    mask_h = jnp.asarray((oh_i == S * ih_i + kh_i - P).astype(np.float32))  # (K, OH, H)

    # LLcat[(co,oh), kw*C + ci*H + ih] = sum_kh W_pt[ci,co,kh,kw] * [oh == S*ih + kh - P]
    # (each (oh, ih) admits at most one kh, so entries are exact weight values)
    llcat = jnp.einsum("iokl,kqh->oqlih", weight, mask_h)            # (Cout,OH,K,Cin,H)
    llcat = llcat.reshape(R, KC).astype(jnp.bfloat16)                # (R, K*C)

    kernel = functools.partial(_convt_fused_kernel, K=K, C=C)

    # Realistic (selector-free) cost estimate.
    flops = N * (K * 2 * C * W * OW_PAD + 2 * R * KC * OW_PAD)
    bytes_accessed = (2 * N * C * W          # x (bf16)
                      + 2 * K * W * OW_PAD   # CS (bf16)
                      + 2 * R * KC           # LLcat (bf16)
                      + 4 * N * R * OW_PAD)  # output (f32)

    out2d = pl.pallas_call(
        kernel,
        out_shape=jax.ShapeDtypeStruct((N, R, OW_PAD), jnp.float32),
        grid_spec=pltpu.PrefetchScalarGridSpec(
            num_scalar_prefetch=0,
            grid=(N,),
            in_specs=[
                pl.BlockSpec((1, C, W), lambda n: (n, 0, 0)),
                pl.BlockSpec((K, W, OW_PAD), lambda n: (0, 0, 0)),
                pl.BlockSpec((R, KC), lambda n: (0, 0)),
            ],
            out_specs=pl.BlockSpec((1, R, OW_PAD), lambda n: (n, 0, 0)),
            scratch_shapes=[pltpu.VMEM((KC, OW_PAD), jnp.bfloat16)],
        ),
        compiler_params=pltpu.CompilerParams(
            dimension_semantics=("parallel",),
        ),
        cost_estimate=pl.CostEstimate(
            flops=flops, transcendentals=0, bytes_accessed=bytes_accessed),
    )(x3, cs, llcat)

    # Slice the lane padding away (tiny HBM copy), then FREE reshape to NCHW.
    return out2d[:, :, :OW].reshape(N, Cout, OH, OW)


# ------------------------------ Reference -------------------------------------
def upsampling_block_reference(x_nchw, weight, kernel_size=3, stride=2, padding=0):
    k, s, p = kernel_size, stride, padding
    # ConvT(x, W) == conv(dilate(x, s), flip(W).swap(io)) with pad k-1-p
    w_t = jnp.transpose(weight[:, :, ::-1, ::-1], (1, 0, 2, 3))    # (Cout, Cin, k, k)
    return lax.conv_general_dilated(
        x_nchw, w_t,
        window_strides=(1, 1),
        padding=[(k - 1 - p, k - 1 - p)] * 2,
        lhs_dilation=(s, s),
        dimension_numbers=("NCHW", "OIHW", "NCHW"),
        precision=lax.Precision.HIGHEST,
    )


# ---------------------------------- Main ---------------------------------------
if __name__ == "__main__":
    key = jax.random.PRNGKey(0)
    kx, kw_key = jax.random.split(key)

    N, Cin, Cout, H, W = 2, 4, 8, 16, 16
    x = jax.random.normal(kx, (N, Cin, H, W), dtype=jnp.float32)
    # PyTorch ConvTranspose2d weight shape: (in_channels, out_channels, kH, kW)
    weight = jax.random.normal(kw_key, (Cin, Cout, 3, 3), dtype=jnp.float32) * 0.1

    out = jax.block_until_ready(upsampling_block_forward(x, weight))
    assert out.shape == (N, Cout, (H - 1) * 2 + 3, (W - 1) * 2 + 3), out.shape

    # Tight check: the kernel feeds the MXU bf16 operands with f32 accumulation, so it
    # must match the reference evaluated on bf16-rounded inputs to f32 accuracy.
    x_b = x.astype(jnp.bfloat16).astype(jnp.float32)
    w_b = weight.astype(jnp.bfloat16).astype(jnp.float32)
    ref_b = upsampling_block_reference(x_b, w_b)
    assert jnp.allclose(out, ref_b, rtol=1e-4, atol=1e-4), (
        float(jnp.max(jnp.abs(out - ref_b))))

    # Sanity check against the full-f32 reference at bf16-appropriate tolerance.
    ref_f32 = upsampling_block_reference(x, weight)
    assert jnp.allclose(out, ref_f32, rtol=5e-2, atol=5e-2), (
        float(jnp.max(jnp.abs(out - ref_f32))))

    print("KERNEL_OK")
</pallas_src>

<mosaic_0001>
module attributes {stable_mosaic.version = 11 : i64} {
  func.func @_convt_fused_kernel(%arg0: i32, %arg1: memref<1x64x16xbf16, #tpu.memory_space<vmem>>, %arg2: memref<3x16x128xbf16, #tpu.memory_space<vmem>>, %arg3: memref<264x192xbf16, #tpu.memory_space<vmem>>, %arg4: memref<1x264x128xf32, #tpu.memory_space<vmem>>, %arg5: memref<192x128xbf16, #tpu.memory_space<vmem>>) attributes {dimension_semantics = [#tpu.dimension_semantics<parallel>], iteration_bounds = array<i64: 2>, scalar_prefetch = 0 : i64, scratch_operands = 1 : i64, tpu.core_type = #tpu.core_type<tc>, window_params = [{transform_indices = @transform_0, window_bounds = array<i64: 1, 64, 16>}, {pipeline_mode = #tpu.pipeline_mode<synchronous>, transform_indices = @transform_1, window_bounds = array<i64: 3, 16, 128>}, {pipeline_mode = #tpu.pipeline_mode<synchronous>, transform_indices = @transform_2, window_bounds = array<i64: 264, 192>}, {transform_indices = @transform_3, window_bounds = array<i64: 1, 264, 128>}]} {
    %c0 = arith.constant 0 : index
    %c0_0 = arith.constant 0 : index
    %c0_1 = arith.constant 0 : index
    %0 = vector.load %arg1[%c0, %c0_0, %c0_1] : memref<1x64x16xbf16, #tpu.memory_space<vmem>>, vector<1x64x16xbf16>
    %1 = vector.shape_cast %0 : vector<1x64x16xbf16> to vector<64x16xbf16>
    %c0_2 = arith.constant 0 : index
    %c0_3 = arith.constant 0 : index
    %c0_4 = arith.constant 0 : index
    %2 = vector.load %arg2[%c0_2, %c0_3, %c0_4] : memref<3x16x128xbf16, #tpu.memory_space<vmem>>, vector<1x16x128xbf16>
    %3 = vector.shape_cast %2 : vector<1x16x128xbf16> to vector<16x128xbf16>
    %cst = arith.constant dense<0.000000e+00> : vector<64x128xf32>
    %4 = tpu.matmul %1, %3, %cst {dimension_numbers = #tpu.dot_dimension_numbers<[1], [0], [0], [1], [0, 0, 1, 1], [], []>} : vector<64x16xbf16>, vector<16x128xbf16>, vector<64x128xf32> -> vector<64x128xf32>
    %5 = arith.truncf %4 : vector<64x128xf32> to vector<64x128xbf16>
    %c0_5 = arith.constant 0 : index
    %c0_6 = arith.constant 0 : index
    %6 = vector.load %arg5[%c0_5, %c0_6] : memref<192x128xbf16, #tpu.memory_space<vmem>>, vector<64x128xbf16>
    tpu.vector_store %arg5[%c0_5, %c0_6], %5 {strides = array<i32>} : memref<192x128xbf16, #tpu.memory_space<vmem>>, vector<64x128xbf16>,
    %c1 = arith.constant 1 : index
    %c0_7 = arith.constant 0 : index
    %c0_8 = arith.constant 0 : index
    %7 = vector.load %arg2[%c1, %c0_7, %c0_8] : memref<3x16x128xbf16, #tpu.memory_space<vmem>>, vector<1x16x128xbf16>
    %8 = vector.shape_cast %7 : vector<1x16x128xbf16> to vector<16x128xbf16>
    %cst_9 = arith.constant dense<0.000000e+00> : vector<64x128xf32>
    %9 = tpu.matmul %1, %8, %cst_9 {dimension_numbers = #tpu.dot_dimension_numbers<[1], [0], [0], [1], [0, 0, 1, 1], [], []>} : vector<64x16xbf16>, vector<16x128xbf16>, vector<64x128xf32> -> vector<64x128xf32>
    %10 = arith.truncf %9 : vector<64x128xf32> to vector<64x128xbf16>
    %c64 = arith.constant 64 : index
    %c0_10 = arith.constant 0 : index
    %11 = vector.load %arg5[%c64, %c0_10] : memref<192x128xbf16, #tpu.memory_space<vmem>>, vector<64x128xbf16>
    tpu.vector_store %arg5[%c64, %c0_10], %10 {strides = array<i32>} : memref<192x128xbf16, #tpu.memory_space<vmem>>, vector<64x128xbf16>,
    %c2 = arith.constant 2 : index
    %c0_11 = arith.constant 0 : index
    %c0_12 = arith.constant 0 : index
    %12 = vector.load %arg2[%c2, %c0_11, %c0_12] : memref<3x16x128xbf16, #tpu.memory_space<vmem>>, vector<1x16x128xbf16>
    %13 = vector.shape_cast %12 : vector<1x16x128xbf16> to vector<16x128xbf16>
    %cst_13 = arith.constant dense<0.000000e+00> : vector<64x128xf32>
    %14 = tpu.matmul %1, %13, %cst_13 {dimension_numbers = #tpu.dot_dimension_numbers<[1], [0], [0], [1], [0, 0, 1, 1], [], []>} : vector<64x16xbf16>, vector<16x128xbf16>, vector<64x128xf32> -> vector<64x128xf32>
    %15 = arith.truncf %14 : vector<64x128xf32> to vector<64x128xbf16>
    %c128 = arith.constant 128 : index
    %c0_14 = arith.constant 0 : index
    %16 = vector.load %arg5[%c128, %c0_14] : memref<192x128xbf16, #tpu.memory_space<vmem>>, vector<64x128xbf16>
    tpu.vector_store %arg5[%c128, %c0_14], %15 {strides = array<i32>} : memref<192x128xbf16, #tpu.memory_space<vmem>>, vector<64x128xbf16>,
    %c0_15 = arith.constant 0 : index
    %c0_16 = arith.constant 0 : index
    %17 = vector.load %arg3[%c0_15, %c0_16] : memref<264x192xbf16, #tpu.memory_space<vmem>>, vector<264x192xbf16>
    %c0_17 = arith.constant 0 : index
    %c0_18 = arith.constant 0 : index
    %18 = vector.load %arg5[%c0_17, %c0_18] : memref<192x128xbf16, #tpu.memory_space<vmem>>, vector<192x128xbf16>
    %cst_19 = arith.constant dense<0.000000e+00> : vector<264x128xf32>
    %19 = tpu.matmul %17, %18, %cst_19 {dimension_numbers = #tpu.dot_dimension_numbers<[1], [0], [0], [1], [0, 0, 1, 1], [], []>} : vector<264x192xbf16>, vector<192x128xbf16>, vector<264x128xf32> -> vector<264x128xf32>
    %c0_20 = arith.constant 0 : index
    %c0_21 = arith.constant 0 : index
    %c0_22 = arith.constant 0 : index
    %20 = vector.load %arg4[%c0_20, %c0_21, %c0_22] : memref<1x264x128xf32, #tpu.memory_space<vmem>>, vector<1x264x128xf32>
    %21 = vector.shape_cast %20 : vector<1x264x128xf32> to vector<264x128xf32>
    %22 = vector.shape_cast %19 : vector<264x128xf32> to vector<1x264x128xf32>
    tpu.vector_store %arg4[%c0_20, %c0_21, %c0_22], %22 {strides = array<i32>} : memref<1x264x128xf32, #tpu.memory_space<vmem>>, vector<1x264x128xf32>,
    return
  }
  func.func @transform_0(%arg0: i32) -> (i32, i32, i32) {
    %c0_i32 = arith.constant 0 : i32
    %c0_i32_0 = arith.constant 0 : i32
    %c0_i32_1 = arith.constant 0 : i32
    return %arg0, %c0_i32, %c0_i32_0 : i32, i32, i32
  }
  func.func @transform_1(%arg0: i32) -> (i32, i32, i32) {
    %c0_i32 = arith.constant 0 : i32
    %c0_i32_0 = arith.constant 0 : i32
    %c0_i32_1 = arith.constant 0 : i32
    %c0_i32_2 = arith.constant 0 : i32
    return %c0_i32, %c0_i32_0, %c0_i32_1 : i32, i32, i32
  }
  func.func @transform_2(%arg0: i32) -> (i32, i32) {
    %c0_i32 = arith.constant 0 : i32
    %c0_i32_0 = arith.constant 0 : i32
    %c0_i32_1 = arith.constant 0 : i32
    return %c0_i32, %c0_i32_0 : i32, i32
  }
  func.func @transform_3(%arg0: i32) -> (i32, i32, i32) {
    %c0_i32 = arith.constant 0 : i32
    %c0_i32_0 = arith.constant 0 : i32
    %c0_i32_1 = arith.constant 0 : i32
    return %arg0, %c0_i32, %c0_i32_0 : i32, i32, i32
  }
}

</mosaic_0001>

<bundles_post_ra>
// kernel: upsampling_block_forward.1
= control target key start
LH: loop header
LB: loop body
LE: loop exit
PB: predicated region body
PF: predicated region fallthrough
CT: control target
= control target key end

     0   :  { %s1211_s12 = smov 0   ;;  %s1428_s0 = inlined_call_operand.vmem [shape: bf16[2,64,16], index: 0, kind: input, shape index: {}]   ;;  %s1429_s1 = inlined_call_operand.vmem [shape: bf16[3,16,128], index: 1, kind: input, shape index: {}]   ;;  %s1430_s2 = inlined_call_operand.vmem [shape: bf16[264,192], index: 2, kind: input, shape index: {}]   ;;  %s1431_s3 = inlined_call_operand.vmem [shape: f32[2,264,128], index: 3, kind: output, shape index: {}]  }
   0x1 LB: > { %s961_s13 = sadd.s32 4294967295, %s1188_s12   ;;  %p965_p0 = scmp.ge.s32.totalorder %s1188_s12, 1  ;;  %s1188_s12 = sphi %s1211_s12, %s13_s12  }
   0x2   : > { %p137_p1 = scmp.lt.s32.totalorder %s1188_s12, 3 }
   0x4   : > { %p138_p2 = pnand %p965_p0, %p137_p1 }
   0x5   : > { %v1125_v0 = vld [vmem:[%s1429_s1] sm:$0xff] (!%p138_p2)   ;;  %p161_p3 = scmp.lt.s32.totalorder (!%p138_p2), %s961_s13, 1  ;;  %v1130_v1 = vld [vmem:[%s1429_s1 + $0x8] sm:$0xff] (!%p138_p2)   ;;  %v1131_v2 = vld [vmem:[%s1429_s1 + $0x10] sm:$0xff] (!%p138_p2)   ;;  %vm208_vm0 = vcmask (!%p138_p2), 130048   ;;  %v1190_v7 = vmov (!%p138_p2), 0  }
   0x6   : > { %141 = sbr.rel (%p138_p2) target bundleno = 569 (0x239), region = 32  ;;  %1061 = vmatprep.subr.bf16.mxu0 (!%p138_p2), %v1125_v0  ;;  %1071 = vmatprep.subr.bf16.mxu1 (!%p138_p2), %v1130_v1  ;;  %v1134_v8 = vld [vmem:[%s1430_s2 + $0x74] ss:$8 sps:$4 sm:$0xff] (!%p138_p2)   ;;  %vm653_vm1 = vcmask (!%p138_p2), 523264   ;;  %v1143_v9 = vld [vmem:[%s1430_s2 + $0x4] ss:$8 sps:$4 sm:$0xff] (!%p138_p2)  }
   0x7   : > { %1062 = vmatpush3.bf16.msra.mxu0 (!%p138_p2), %v1125_v0  ;;  %1072 = vmatpush3.bf16.msra.mxu1 (!%p138_p2), %v1130_v1  ;;  %v1132_v46 = vld [vmem:[%s1430_s2 + $0x70] ss:$8 sps:$4 sm:$0xff] (!%p138_p2)   ;;  %v1141_v47 = vld [vmem:[%s1430_s2] ss:$8 sps:$4 sm:$0xff] (!%p138_p2)   ;;  %v1135_v48 = vld [vmem:[%s1430_s2 + $0x84] ss:$8 sps:$4 sm:$0xff] (!%p138_p2)  }
   0x8   : > { %1081 = vmatprep.subr.bf16.mxu0 (!%p138_p2), %v1131_v2  ;;  %1091 = vmatprep.subr.bf16.mxu1 (!%p138_p2), %v1190_v7  ;;  %v1147_v49 = vld [vmem:[%s1430_s2 + $0x14] ss:$8 sps:$4 sm:$0xff] (!%p138_p2)   ;;  %v1137_v50 = vld [vmem:[%s1430_s2 + $0x80] ss:$8 sps:$4 sm:$0xff] (!%p138_p2)   ;;  %v1149_v51 = vld [vmem:[%s1430_s2 + $0x10] ss:$8 sps:$4 sm:$0xff] (!%p138_p2)  }
   0x9   : > { %v1138_v52 = vld [vmem:[%s1430_s2 + $0x94] ss:$8 sps:$4 sm:$0xff] (!%p138_p2)   ;;  %v1153_v53 = vld [vmem:[%s1430_s2 + $0x24] ss:$8 sps:$4 sm:$0xff] (!%p138_p2)   ;;  %v1140_v54 = vld [vmem:[%s1430_s2 + $0x90] ss:$8 sps:$4 sm:$0xff] (!%p138_p2)  }
   0xa   : > { %v1155_v55 = vld [vmem:[%s1430_s2 + $0x20] ss:$8 sps:$4 sm:$0xff] (!%p138_p2)   ;;  %v1144_v56 = vld [vmem:[%s1430_s2 + $0xa4] ss:$8 sps:$4 sm:$0xff] (!%p138_p2)   ;;  %v1159_v57 = vld [vmem:[%s1430_s2 + $0x34] ss:$8 sps:$4 sm:$0xff] (!%p138_p2)  }
   0xb   : > { %v1146_v58 = vld [vmem:[%s1430_s2 + $0xa0] ss:$8 sps:$4 sm:$0xff] (!%p138_p2)   ;;  %v1161_v59 = vld [vmem:[%s1430_s2 + $0x30] ss:$8 sps:$4 sm:$0xff] (!%p138_p2)   ;;  %v1150_v60 = vld [vmem:[%s1430_s2 + $0xb4] ss:$8 sps:$4 sm:$0xff] (!%p138_p2)  }
   0xc   : > { %v1165_v61 = vld [vmem:[%s1430_s2 + $0x44] ss:$8 sps:$4 sm:$0xff] (!%p138_p2)   ;;  %v1152_v62 = vld [vmem:[%s1430_s2 + $0xb0] ss:$8 sps:$4 sm:$0xff] (!%p138_p2)   ;;  %v1167_v63 = vld [vmem:[%s1430_s2 + $0x40] ss:$8 sps:$4 sm:$0xff] (!%p138_p2)  }
   0xd   : > { %s1433_s13 = smov (!%p161_p3, %s961_s13), 1  ;;  %v1156_v0 = vld [vmem:[%s1430_s2 + $0xc4] ss:$8 sps:$4 sm:$0xff]   ;;  %v1171_v1 = vld [vmem:[%s1430_s2 + $0x54] ss:$8 sps:$4 sm:$0xff]  }
   0xe   : > { %s1045_s20 = sshll.u32 %s1433_s13, 5  ;;  %s1115_s15 = smul.u32 264, %s1433_s13 }
   0xf   : > { %s165_s23 = scalar_lea.vmem %s1428_s0, %s1045_s20 }
  0x10   : > { %v1126_v3 = vld [vmem:[%s165_s23] sm:$0xff]   ;;  %v1127_v4 = vld [vmem:[%s165_s23 + $0x8] sm:$0xff]   ;;  %v1128_v5 = vld [vmem:[%s165_s23 + $0x10] sm:$0xff]   ;;  %s1390_s18 = scalar_lea.vmem %s1431_s3, %s1115_s15 }
  0x11   : > { %1063 = vmatprep.mubr.msk.bf16.mxu0 %vm208_vm0, %v1126_v3  ;;  %1073 = vmatprep.mubr.msk.bf16.mxu1 %vm208_vm0, %v1126_v3  ;;  %v1129_v6 = vld [vmem:[%s165_s23 + $0x18] sm:$0xff]  }
  0x12   : > { %1064 = vmatmul.mubr.msk.bf16.vlgmr.msra.gmra.mrb[0].mxu0 %vm208_vm0, %v1127_v4  ;;  %1074 = vmatmul.mubr.msk.bf16.vlgmr.msra.gmra.mrb[0].mxu1 %vm208_vm0, %v1127_v4 }
  0x13   : > { %1067 = vmatprep.mubr.msk.bf16.mxu0 %vm208_vm0, %v1128_v5  ;;  %1082 = vmatpush3.bf16.msra.mxu0 %v1131_v2  ;;  %v1158_v2 = vld [vmem:[%s1430_s2 + $0xc0] ss:$8 sps:$4 sm:$0xff]  }
  0x14   : > { %1077 = vmatprep.mubr.msk.bf16.mxu1 %vm208_vm0, %v1128_v5  ;;  %705 = vmatprep.subr.bf16.mxu0 %v1190_v7 }
  0x1a   : > { %1068 = vmatmul.mubr.msk.bf16.gmra.mrb[4].mxu0 %vm208_vm0, %v1129_v6  ;;  %1078 = vmatmul.mubr.msk.bf16.gmra.mrb[4].mxu1 %vm208_vm0, %v1129_v6 }
  0x1b   : > { %1083 = vmatprep.mubr.msk.bf16.mxu0 %vm208_vm0, %v1126_v3  ;;  %1033 = vmatprep.mubr.msk.bf16.mxu1 %vm653_vm1, %v1134_v8  ;;  %v1173_v3 = vld [vmem:[%s1430_s2 + $0x50] ss:$8 sps:$4 sm:$0xff]   ;;  %v1168_v8 = vld [vmem:[%s1430_s2 + $0xe4] ss:$8 sps:$4 sm:$0xff]  }
  0x22   : > { %1084 = vmatmul.mubr.msk.bf16.vlgmr.msra.gmra.mrb[8].mxu0 %vm208_vm0, %v1127_v4  ;;  %v1162_v4 = vld [vmem:[%s1430_s2 + $0xd4] ss:$8 sps:$4 sm:$0xff]  }
  0x23   : > { %1087 = vmatprep.mubr.msk.bf16.mxu0 %vm208_vm0, %v1128_v5  ;;  %v1177_v5 = vld [vmem:[%s1430_s2 + $0x64] ss:$8 sps:$4 sm:$0xff]  }
  0x2a   : > { %1088 = vmatmul.mubr.msk.bf16.gmra.mrb[12].mxu0 %vm208_vm0, %v1129_v6  ;;  %v1164_v6 = vld [vmem:[%s1430_s2 + $0xd0] ss:$8 sps:$4 sm:$0xff]  }
  0x2b   : > { %1026 = vmatprep.mubr.msk.bf16.mxu0 %vm653_vm1, %v1143_v9  ;;  %v1170_v9 = vld [vmem:[%s1430_s2 + $0xe0] ss:$8 sps:$4 sm:$0xff]  }
  0xe5   : > { %v1065_v10 = vpop.f32.mrb[0].mxu0  ;;  %v1075_v11 = vpop.f32.mrb[0].mxu1 }
  0xe6   : > { %v255_v12 = vpop.f32.mrb[1].mxu0  ;;  %v337_v13 = vpop.f32.mrb[1].mxu1 }
  0xe7   : > { %v1066_v14 = vpop.f32.mrb[2].mxu0  ;;  %v1076_v15 = vpop.f32.mrb[2].mxu1 }
  0xe8   : > { %v287_v16 = vpack.c.bf16 %v1066_v14, %v1065_v10  ;;  %v258_v17 = vpop.f32.mrb[3].mxu0  ;;  %v369_v18 = vpack.c.bf16 %v1076_v15, %v1075_v11  ;;  %v340_v19 = vpop.f32.mrb[3].mxu1  ;;  %v1174_v10 = vld [vmem:[%s1430_s2 + $0xf4] ss:$8 sps:$4 sm:$0xff]   ;;  %v490_v11 = vld [vmem:[%s1430_s2 + $0x100] sm:$0xff] }
  0xe9   : > { %v286_v20 = vpack.c.bf16 %v258_v17, %v255_v12  ;;  %v368_v21 = vpack.c.bf16 %v340_v19, %v337_v13  ;;  %v1176_v12 = vld [vmem:[%s1430_s2 + $0xf0] ss:$8 sps:$4 sm:$0xff]   ;;  %v1025_v13 = vcombine.high %v490_v11, %v490_v11  ;;  %v1024_v14 = vcombine.low %v490_v11, %v490_v11 }
  0xeb   : > { %706 = vmatpush1.bf16.msra.mxu0 %v286_v20  ;;  %1103 = vmatpush1.bf16.msra.mxu1 %v286_v20 }
  0xec   : > { %707 = vmatprep.subr.bf16.mxu0 %v1190_v7  ;;  %1092 = vmatprep.subr.bf16.mxu1 %v1190_v7 }
  0xed   : > { %v1069_v22 = vpop.f32.mrb[4].mxu0  ;;  %v1079_v23 = vpop.f32.mrb[4].mxu1 }
  0xee   : > { %v271_v24 = vpop.f32.mrb[5].mxu0  ;;  %v353_v25 = vpop.f32.mrb[5].mxu1 }
  0xef   : > { %v1070_v26 = vpop.f32.mrb[6].mxu0  ;;  %708 = vmatpush1.bf16.msra.mxu0 %v287_v16  ;;  %1104 = vmatpush1.bf16.msra.mxu1 %v287_v16  ;;  %v1080_v27 = vpop.f32.mrb[6].mxu1 }
  0xf0   : > { %v289_v28 = vpack.c.bf16 %v1070_v26, %v1069_v22  ;;  %v274_v29 = vpop.f32.mrb[7].mxu0  ;;  %709 = vmatprep.subr.bf16.mxu0 %v1190_v7  ;;  %1093 = vmatprep.subr.bf16.mxu1 %v1190_v7  ;;  %v371_v30 = vpack.c.bf16 %v1080_v27, %v1079_v23  ;;  %v356_v31 = vpop.f32.mrb[7].mxu1 }
  0xf1   : > { %v288_v32 = vpack.c.bf16 %v274_v29, %v271_v24  ;;  %v370_v33 = vpack.c.bf16 %v356_v31, %v353_v25 }
  0xf3   : > { %710 = vmatpush1.bf16.msra.mxu0 %v288_v32  ;;  %1105 = vmatpush1.bf16.msra.mxu1 %v288_v32 }
  0xf4   : > { %711 = vmatprep.subr.bf16.mxu0 %v1190_v7  ;;  %1094 = vmatprep.subr.bf16.mxu1 %v1190_v7 }
  0xf5   : > { %v1085_v34 = vpop.f32.mrb[8].mxu0 }
  0xf6   : > { %v419_v35 = vpop.f32.mrb[9].mxu0 }
  0xf7   : > { %712 = vmatpush1.bf16.msra.mxu0 %v289_v28  ;;  %1106 = vmatpush1.bf16.msra.mxu1 %v289_v28  ;;  %v1086_v36 = vpop.f32.mrb[10].mxu0 }
  0xf8   : > { %713 = vmatprep.subr.bf16.mxu0 %v1190_v7  ;;  %1095 = vmatprep.subr.bf16.mxu1 %v1190_v7  ;;  %v451_v37 = vpack.c.bf16 %v1086_v36, %v1085_v34  ;;  %v422_v38 = vpop.f32.mrb[11].mxu0 }
  0xf9   : > { %v450_v39 = vpack.c.bf16 %v422_v38, %v419_v35 }
  0xfb   : > { %714 = vmatpush1.bf16.msra.mxu0 %v368_v21  ;;  %1107 = vmatpush1.bf16.msra.mxu1 %v368_v21 }
  0xfc   : > { %715 = vmatprep.subr.bf16.mxu0 %v1190_v7  ;;  %1096 = vmatprep.subr.bf16.mxu1 %v1190_v7 }
  0xfd   : > { %v1089_v40 = vpop.f32.mrb[12].mxu0 }
  0xfe   : > { %v435_v41 = vpop.f32.mrb[13].mxu0 }
  0xff   : > { %716 = vmatpush1.bf16.msra.mxu0 %v369_v18  ;;  %1108 = vmatpush1.bf16.msra.mxu1 %v369_v18  ;;  %v1090_v42 = vpop.f32.mrb[14].mxu0 }
 0x100   : > { %717 = vmatprep.subr.bf16.mxu0 %v1190_v7  ;;  %1097 = vmatprep.subr.bf16.mxu1 %v1190_v7  ;;  %v453_v43 = vpack.c.bf16 %v1090_v42, %v1089_v40  ;;  %v438_v44 = vpop.f32.mrb[15].mxu0 }
 0x101   : > { %v452_v45 = vpack.c.bf16 %v438_v44, %v435_v41 }
 0x103   : > { %718 = vmatpush1.bf16.msra.mxu0 %v370_v33  ;;  %1109 = vmatpush1.bf16.msra.mxu1 %v370_v33 }
 0x104   : > { %719 = vmatprep.subr.bf16.mxu0 %v1190_v7  ;;  %1098 = vmatprep.subr.bf16.mxu1 %v1190_v7 }
 0x107   : > { %720 = vmatpush1.bf16.msra.mxu0 %v371_v30  ;;  %1110 = vmatpush1.bf16.msra.mxu1 %v371_v30 }
 0x108   : > { %721 = vmatprep.subr.bf16.mxu0 %v1190_v7  ;;  %1099 = vmatprep.subr.bf16.mxu1 %v1190_v7 }
 0x10b   : > { %722 = vmatpush1.bf16.msra.mxu0 %v450_v39  ;;  %1111 = vmatpush1.bf16.msra.mxu1 %v450_v39 }
 0x10c   : > { %723 = vmatprep.subr.bf16.mxu0 %v1190_v7  ;;  %1100 = vmatprep.subr.bf16.mxu1 %v1190_v7 }
 0x10f   : > { %724 = vmatpush1.bf16.msra.mxu0 %v451_v37  ;;  %1112 = vmatpush1.bf16.msra.mxu1 %v451_v37 }
 0x110   : > { %725 = vmatprep.subr.bf16.mxu0 %v1190_v7  ;;  %1101 = vmatprep.subr.bf16.mxu1 %v1190_v7 }
 0x113   : > { %726 = vmatpush1.bf16.msra.mxu0 %v452_v45  ;;  %1113 = vmatpush1.bf16.msra.mxu1 %v452_v45 }
 0x114   : > { %727 = vmatprep.subr.bf16.mxu0 %v1190_v7  ;;  %1102 = vmatprep.subr.bf16.mxu1 %v1190_v7  ;;  %v1179_v7 = vld [vmem:[%s1430_s2 + $0x60] ss:$8 sps:$4 sm:$0xff]  }
 0x117   : > { %728 = vmatpush1.bf16.msra.mxu0 %v453_v43  ;;  %1114 = vmatpush1.bf16.msra.mxu1 %v453_v43 }
 0x11a   : > { %794 = vmatmul.mubr.bf16.vlgmr.msra.gmra.mrb[8].mxu1 %v1132_v46  ;;  %738 = vmatmul.mubr.bf16.vlgmr.msra.gmra.mrb[16].mxu0 %v1141_v47 }
 0x11b   : > { %1034 = vmatprep.mubr.msk.bf16.mxu1 %vm653_vm1, %v1135_v48  ;;  %1027 = vmatprep.mubr.msk.bf16.mxu0 %vm653_vm1, %v1147_v49 }
 0x122   : > { %802 = vmatmul.mubr.bf16.gmra.mrb[12].mxu1 %v1137_v50  ;;  %746 = vmatmul.mubr.bf16.gmra.mrb[20].mxu0 %v1149_v51 }
 0x123   : > { %1035 = vmatprep.mubr.msk.bf16.mxu1 %vm653_vm1, %v1138_v52  ;;  %1028 = vmatprep.mubr.msk.bf16.mxu0 %vm653_vm1, %v1153_v53 }
 0x12a   : > { %810 = vmatmul.mubr.bf16.gmra.mrb[16].mxu1 %v1140_v54  ;;  %754 = vmatmul.mubr.bf16.gmra.mrb[24].mxu0 %v1155_v55 }
 0x12b   : > { %1036 = vmatprep.mubr.msk.bf16.mxu1 %vm653_vm1, %v1144_v56  ;;  %1029 = vmatprep.mubr.msk.bf16.mxu0 %vm653_vm1, %v1159_v57 }
 0x132   : > { %818 = vmatmul.mubr.bf16.gmra.mrb[20].mxu1 %v1146_v58  ;;  %762 = vmatmul.mubr.bf16.gmra.mrb[28].mxu0 %v1161_v59 }
 0x133   : > { %1037 = vmatprep.mubr.msk.bf16.mxu1 %vm653_vm1, %v1150_v60  ;;  %1030 = vmatprep.mubr.msk.bf16.mxu0 %vm653_vm1, %v1165_v61 }
 0x13a   : > { %826 = vmatmul.mubr.bf16.gmra.mrb[24].mxu1 %v1152_v62  ;;  %770 = vmatmul.mubr.bf16.gmra.mrb[32].mxu0 %v1167_v63 }
 0x13b   : > { %1038 = vmatprep.mubr.msk.bf16.mxu1 %vm653_vm1, %v1156_v0  ;;  %1031 = vmatprep.mubr.msk.bf16.mxu0 %vm653_vm1, %v1171_v1 }
 0x142   : > { %834 = vmatmul.mubr.bf16.gmra.mrb[28].mxu1 %v1158_v2  ;;  %778 = vmatmul.mubr.bf16.gmra.mrb[36].mxu0 %v1173_v3 }
 0x143   : > { %1039 = vmatprep.mubr.msk.bf16.mxu1 %vm653_vm1, %v1162_v4  ;;  %1032 = vmatprep.mubr.msk.bf16.mxu0 %vm653_vm1, %v1177_v5 }
 0x14a   : > { %842 = vmatmul.mubr.bf16.gmra.mrb[32].mxu1 %v1164_v6  ;;  %786 = vmatmul.mubr.bf16.gmra.mrb[40].mxu0 %v1179_v7 }
 0x14b   : > { %1040 = vmatprep.mubr.msk.bf16.mxu1 %vm653_vm1, %v1168_v8 }
 0x152   : > { %850 = vmatmul.mubr.bf16.gmra.mrb[36].mxu1 %v1170_v9 }
 0x153   : > { %1041 = vmatprep.mubr.msk.bf16.mxu1 %vm653_vm1, %v1174_v10 }
 0x15a   : > { %858 = vmatmul.mubr.bf16.gmra.mrb[40].mxu1 %v1176_v12 }
 0x15b   : > { %1042 = vmatprep.mubr.msk.bf16.mxu1 %vm653_vm1, %v1025_v13 }
 0x162   : > { %866 = vmatmul.mubr.bf16.gmra.mrb[44].mxu1 %v1024_v14 }
 0x1ed   : > { %v795_v15 = vpop.f32.mrb[8].mxu1  ;;  %v739_v16 = vpop.f32.mrb[16].mxu0 }
 0x1ee   : > { %887 = vst [vmem:[%s1390_s18 + $0x70] sm:$0xff] %v795_v15  ;;  %v797_v17 = vpop.f32.mrb[9].mxu1  ;;  %873 = vst [vmem:[%s1390_s18] sm:$0xff] %v739_v16  ;;  %v741_v18 = vpop.f32.mrb[17].mxu0 }
 0x1ef   : > { %v798_v19 = vpop.f32.mrb[10].mxu1  ;;  %v742_v20 = vpop.f32.mrb[18].mxu0 }
 0x1f0   : > { %888 = vst [vmem:[%s1390_s18 + $0x78] sm:$0xff] %v798_v19  ;;  %v800_v21 = vpop.f32.mrb[11].mxu1  ;;  %874 = vst [vmem:[%s1390_s18 + $0x8] sm:$0xff] %v742_v20  ;;  %v744_v22 = vpop.f32.mrb[19].mxu0 }
 0x1f5   : > { %v803_v23 = vpop.f32.mrb[12].mxu1  ;;  %v747_v24 = vpop.f32.mrb[20].mxu0 }
 0x1f6   : > { %889 = vst [vmem:[%s1390_s18 + $0x80] sm:$0xff] %v803_v23  ;;  %v805_v25 = vpop.f32.mrb[13].mxu1  ;;  %875 = vst [vmem:[%s1390_s18 + $0x10] sm:$0xff] %v747_v24  ;;  %v749_v26 = vpop.f32.mrb[21].mxu0 }
 0x1f7   : > { %v806_v27 = vpop.f32.mrb[14].mxu1  ;;  %v750_v28 = vpop.f32.mrb[22].mxu0 }
 0x1f8   : > { %890 = vst [vmem:[%s1390_s18 + $0x88] sm:$0xff] %v806_v27  ;;  %v808_v29 = vpop.f32.mrb[15].mxu1  ;;  %876 = vst [vmem:[%s1390_s18 + $0x18] sm:$0xff] %v750_v28  ;;  %v752_v30 = vpop.f32.mrb[23].mxu0 }
 0x1fd   : > { %v811_v31 = vpop.f32.mrb[16].mxu1  ;;  %v755_v32 = vpop.f32.mrb[24].mxu0 }
 0x1fe   : > { %891 = vst [vmem:[%s1390_s18 + $0x90] sm:$0xff] %v811_v31  ;;  %v813_v33 = vpop.f32.mrb[17].mxu1  ;;  %877 = vst [vmem:[%s1390_s18 + $0x20] sm:$0xff] %v755_v32  ;;  %v757_v34 = vpop.f32.mrb[25].mxu0 }
 0x1ff   : > { %v814_v35 = vpop.f32.mrb[18].mxu1  ;;  %v758_v36 = vpop.f32.mrb[26].mxu0 }
 0x200   : > { %892 = vst [vmem:[%s1390_s18 + $0x98] sm:$0xff] %v814_v35  ;;  %v816_v37 = vpop.f32.mrb[19].mxu1  ;;  %878 = vst [vmem:[%s1390_s18 + $0x28] sm:$0xff] %v758_v36  ;;  %v760_v38 = vpop.f32.mrb[27].mxu0 }
 0x205   : > { %v819_v39 = vpop.f32.mrb[20].mxu1  ;;  %v763_v40 = vpop.f32.mrb[28].mxu0 }
 0x206   : > { %893 = vst [vmem:[%s1390_s18 + $0xa0] sm:$0xff] %v819_v39  ;;  %v821_v41 = vpop.f32.mrb[21].mxu1  ;;  %879 = vst [vmem:[%s1390_s18 + $0x30] sm:$0xff] %v763_v40  ;;  %v765_v42 = vpop.f32.mrb[29].mxu0 }
 0x207   : > { %v822_v43 = vpop.f32.mrb[22].mxu1  ;;  %v766_v44 = vpop.f32.mrb[30].mxu0 }
 0x208   : > { %894 = vst [vmem:[%s1390_s18 + $0xa8] sm:$0xff] %v822_v43  ;;  %v824_v45 = vpop.f32.mrb[23].mxu1  ;;  %880 = vst [vmem:[%s1390_s18 + $0x38] sm:$0xff] %v766_v44  ;;  %v768_v46 = vpop.f32.mrb[31].mxu0 }
 0x20d   : > { %v827_v47 = vpop.f32.mrb[24].mxu1  ;;  %v771_v48 = vpop.f32.mrb[32].mxu0 }
 0x20e   : > { %895 = vst [vmem:[%s1390_s18 + $0xb0] sm:$0xff] %v827_v47  ;;  %v829_v49 = vpop.f32.mrb[25].mxu1  ;;  %881 = vst [vmem:[%s1390_s18 + $0x40] sm:$0xff] %v771_v48  ;;  %v773_v50 = vpop.f32.mrb[33].mxu0 }
 0x20f   : > { %v830_v51 = vpop.f32.mrb[26].mxu1  ;;  %v774_v52 = vpop.f32.mrb[34].mxu0 }
 0x210   : > { %896 = vst [vmem:[%s1390_s18 + $0xb8] sm:$0xff] %v830_v51  ;;  %v832_v53 = vpop.f32.mrb[27].mxu1  ;;  %882 = vst [vmem:[%s1390_s18 + $0x48] sm:$0xff] %v774_v52  ;;  %v776_v54 = vpop.f32.mrb[35].mxu0 }
 0x215   : > { %v835_v55 = vpop.f32.mrb[28].mxu1  ;;  %v779_v56 = vpop.f32.mrb[36].mxu0 }
 0x216   : > { %897 = vst [vmem:[%s1390_s18 + $0xc0] sm:$0xff] %v835_v55  ;;  %v837_v57 = vpop.f32.mrb[29].mxu1  ;;  %883 = vst [vmem:[%s1390_s18 + $0x50] sm:$0xff] %v779_v56  ;;  %v781_v58 = vpop.f32.mrb[37].mxu0 }
 0x217   : > { %v838_v59 = vpop.f32.mrb[30].mxu1  ;;  %v782_v60 = vpop.f32.mrb[38].mxu0 }
 0x218   : > { %898 = vst [vmem:[%s1390_s18 + $0xc8] sm:$0xff] %v838_v59  ;;  %v840_v61 = vpop.f32.mrb[31].mxu1  ;;  %884 = vst [vmem:[%s1390_s18 + $0x58] sm:$0xff] %v782_v60  ;;  %v784_v62 = vpop.f32.mrb[39].mxu0 }
 0x21d   : > { %v843_v63 = vpop.f32.mrb[32].mxu1  ;;  %v787_v0 = vpop.f32.mrb[40].mxu0 }
 0x21e   : > { %899 = vst [vmem:[%s1390_s18 + $0xd0] sm:$0xff] %v843_v63  ;;  %v845_v1 = vpop.f32.mrb[33].mxu1  ;;  %885 = vst [vmem:[%s1390_s18 + $0x60] sm:$0xff] %v787_v0  ;;  %v789_v2 = vpop.f32.mrb[41].mxu0 }
 0x21f   : > { %v846_v3 = vpop.f32.mrb[34].mxu1  ;;  %v790_v4 = vpop.f32.mrb[42].mxu0 }
 0x220   : > { %900 = vst [vmem:[%s1390_s18 + $0xd8] sm:$0xff] %v846_v3  ;;  %v848_v5 = vpop.f32.mrb[35].mxu1  ;;  %886 = vst [vmem:[%s1390_s18 + $0x68] sm:$0xff] %v790_v4  ;;  %v792_v6 = vpop.f32.mrb[43].mxu0 }
 0x225   : > { %v851_v7 = vpop.f32.mrb[36].mxu1 }
 0x226   : > { %901 = vst [vmem:[%s1390_s18 + $0xe0] sm:$0xff] %v851_v7  ;;  %v853_v8 = vpop.f32.mrb[37].mxu1 }
 0x227   : > { %v854_v9 = vpop.f32.mrb[38].mxu1 }
 0x228   : > { %902 = vst [vmem:[%s1390_s18 + $0xe8] sm:$0xff] %v854_v9  ;;  %v856_v10 = vpop.f32.mrb[39].mxu1 }
 0x22d   : > { %v859_v11 = vpop.f32.mrb[40].mxu1 }
 0x22e   : > { %903 = vst [vmem:[%s1390_s18 + $0xf0] sm:$0xff] %v859_v11  ;;  %v861_v12 = vpop.f32.mrb[41].mxu1 }
 0x22f   : > { %v862_v13 = vpop.f32.mrb[42].mxu1 }
 0x230   : > { %904 = vst [vmem:[%s1390_s18 + $0xf8] sm:$0xff] %v862_v13  ;;  %v864_v14 = vpop.f32.mrb[43].mxu1 }
 0x235   : > { %v867_v15 = vpop.f32.mrb[44].mxu1 }
 0x236   : > { %905 = vst [vmem:[%s1390_s18 + $0x100] sm:$0xff] %v867_v15  ;;  %v869_v16 = vpop.f32.mrb[45].mxu1 }
 0x237   : > { %v870_v17 = vpop.f32.mrb[46].mxu1 }
 0x238   : > { %v871_v18 = vpop.f32.mrb[47].mxu1 }
 0x239 PF: > { %s13_s12 = sadd.s32 1, %s1188_s12  }
 0x23a   : > { %p10_p4 = scmp.ge.s32.totalorder %s13_s12, 4  }
 0x23c   :  { %12 = sbr.rel (!%p10_p4) target bundleno = 1 (0x1), region = 64 }

</bundles_post_ra>
